<compile_context>
chip_gen: v7x
topology: tpu7x:2x2x1
jax: 0.10.0
libtpu: 0.0.40
codegen_flags: <defaults>
</compile_context>

<pallas_src>
import functools

import jax
import jax.numpy as jnp
from jax.experimental import pallas as pl
from jax.experimental.pallas import tpu as pltpu

_LANE = 128
_MIN_PIPELINE_BYTES = 1 * 1024 * 1024   # below this, 1 block: nothing to pipeline
_MIN_STEPS = 8                          # target grid depth (pipelining + megacore)
_SMALL_RAGGED_ELEMS = 64 * 1024         # ragged tensors up to this run as one block


def _hw_budget():
    """(vmem_limit_bytes, target_block_bytes) for the current TPU generation."""
    try:
        cap = int(pltpu.get_tpu_info().vmem_capacity_bytes)
    except Exception:
        cap = 64 * 1024 * 1024          # conservative (v7x-sized) fallback
    vmem_limit = min(cap // 2, 96 * 1024 * 1024)          # <= 50% of physical VMEM
    # Block target counts in+out bytes; double-buffered working set ~= 2x this,
    # leaving plenty of headroom under vmem_limit on every generation.
    block_bytes = max(2 * 1024 * 1024, vmem_limit // 6)   # ~10 MiB v5e/v6e, ~5 MiB v7x
    return vmem_limit, block_bytes


def _sublane(dtype) -> int:
    """Sublane packing multiple: 8 for 4-byte, 16 for 2-byte, 32 for 1-byte dtypes."""
    return max(8, 32 // jnp.dtype(dtype).itemsize)


def _pick_cols(n: int) -> int:
    """Widest lane-dense last dim dividing n, preferring >= 8 full sublane rows."""
    candidates = (4096, 2048, 1024, 512, 256, 128)
    for c in candidates:
        if n % c == 0 and (n // c) % 8 == 0:
            return c
    for c in candidates:
        if n % c == 0:
            return c
    return _LANE


def _log1p_kernel(x_ref, o_ref, *, compute_dtype):
    # y = log(1 + x): VALU add + EUP log; HBM bandwidth binds first, so the
    # widened compute dtype is free.
    o_ref[...] = jnp.log1p(x_ref[...].astype(compute_dtype)).astype(o_ref.dtype)


def _streamed_2d(x2d, out_dtype, compute_dtype):
    """Pipelined lane-dense 2D slab path (n % 128 == 0)."""
    rows, cols = x2d.shape
    in_b = jnp.dtype(x2d.dtype).itemsize
    out_b = jnp.dtype(out_dtype).itemsize
    vmem_limit, block_bytes = _hw_budget()
    sub = max(_sublane(x2d.dtype), _sublane(out_dtype))

    row_bytes = cols * (in_b + out_b)          # in + out stream bytes per row
    total_bytes = rows * row_bytes

    # Biggest sublane-aligned row-tile that keeps (in+out) block ~block_bytes.
    tile_rows = max(sub, (block_bytes // row_bytes) // sub * sub)
    if total_bytes >= _MIN_PIPELINE_BYTES:
        # Keep >= _MIN_STEPS grid steps so load/compute/store overlap and the
        # "parallel" axis gives both v7x TensorCores work (imbalance <= 1 step).
        cap = max(sub, (rows // _MIN_STEPS) // sub * sub)
        tile_rows = min(tile_rows, cap)
    tile_rows = min(tile_rows, rows)           # full dim for small inputs

    grid = (pl.cdiv(rows, tile_rows),)
    n = rows * cols
    return pl.pallas_call(
        functools.partial(_log1p_kernel, compute_dtype=compute_dtype),
        out_shape=jax.ShapeDtypeStruct((rows, cols), out_dtype),
        grid_spec=pltpu.PrefetchScalarGridSpec(
            num_scalar_prefetch=0,
            grid=grid,
            in_specs=[pl.BlockSpec((tile_rows, cols), lambda i: (i, 0))],
            out_specs=pl.BlockSpec((tile_rows, cols), lambda i: (i, 0)),
        ),
        compiler_params=pltpu.CompilerParams(
            dimension_semantics=("parallel",),
            vmem_limit_bytes=vmem_limit,
        ),
        cost_estimate=pl.CostEstimate(
            flops=n, transcendentals=n, bytes_accessed=n * (in_b + out_b)),
    )(x2d)


def _streamed_1d(x_flat, out_dtype, compute_dtype):
    """Large ragged sizes: 1-D lane-aligned blocks; Pallas masks the partial
    final block (no host-side pad or output slice)."""
    (n,) = x_flat.shape
    in_b = jnp.dtype(x_flat.dtype).itemsize
    out_b = jnp.dtype(out_dtype).itemsize
    vmem_limit, block_bytes = _hw_budget()

    chunk = _LANE * max(_sublane(x_flat.dtype), _sublane(out_dtype))  # dense (sub,128) granule
    block = max(chunk, (block_bytes // (in_b + out_b)) // chunk * chunk)
    if n * (in_b + out_b) >= _MIN_PIPELINE_BYTES:
        cap = max(chunk, (n // _MIN_STEPS) // chunk * chunk)
        block = min(block, cap)
    block = min(block, max(chunk, (n // chunk) * chunk))

    grid = (pl.cdiv(n, block),)
    return pl.pallas_call(
        functools.partial(_log1p_kernel, compute_dtype=compute_dtype),
        out_shape=jax.ShapeDtypeStruct((n,), out_dtype),
        grid_spec=pltpu.PrefetchScalarGridSpec(
            num_scalar_prefetch=0,
            grid=grid,
            in_specs=[pl.BlockSpec((block,), lambda i: (i,))],
            out_specs=pl.BlockSpec((block,), lambda i: (i,)),
        ),
        compiler_params=pltpu.CompilerParams(
            dimension_semantics=("parallel",),
            vmem_limit_bytes=vmem_limit,
        ),
        cost_estimate=pl.CostEstimate(
            flops=n, transcendentals=n, bytes_accessed=n * (in_b + out_b)),
    )(x_flat)


def log_mod(x: jax.Array) -> jax.Array:
    """Pallas implementation of LogMod.forward: log(1 + x), any shape/dtype."""
    orig_shape = x.shape
    # torch.log(1.0 + int_tensor) promotes to float32; float dtypes are kept as-is.
    out_dtype = x.dtype if jnp.issubdtype(x.dtype, jnp.floating) else jnp.float32
    compute_dtype = jnp.promote_types(x.dtype, jnp.float32)

    n = x.size
    if n == 0:
        return jnp.zeros(orig_shape, out_dtype)

    if n % _LANE == 0:
        # Common case (e.g. NCHW with B*C*H*W a multiple of 128): lane-dense 2D
        # slab, no padding, no output slice; reshapes are metadata-only.
        cols = _pick_cols(n)
        out2d = _streamed_2d(x.reshape(n // cols, cols), out_dtype, compute_dtype)
        return out2d.reshape(orig_shape)

    # Ragged sizes: never pad/slice on the host (that costs 2-3x HBM traffic).
    if n <= _SMALL_RAGGED_ELEMS:
        # Single full-array block (block == full dims, so no (8,128) constraint).
        out2d = pl.pallas_call(
            functools.partial(_log1p_kernel, compute_dtype=compute_dtype),
            out_shape=jax.ShapeDtypeStruct((1, n), out_dtype),
        )(x.reshape(1, n))
        return out2d.reshape(orig_shape)

    # Large ragged: stream 1-D lane-aligned blocks, masked partial final block.
    out_flat = _streamed_1d(x.reshape(-1), out_dtype, compute_dtype)
    return out_flat.reshape(orig_shape)


if __name__ == "__main__":
    key = jax.random.PRNGKey(0)

    # Small NCHW input consistent with the module's typical usage (128-aligned path).
    x = jax.random.uniform(key, (2, 4, 16, 16), dtype=jnp.float32,
                           minval=0.0, maxval=2.0)
    y = jax.block_until_ready(log_mod(x))
    y_ref = jnp.log(1.0 + x)
    assert y.shape == x.shape and y.dtype == x.dtype
    assert jnp.allclose(y, y_ref, atol=1e-6, rtol=1e-5)

    # Non-128-aligned size exercises the ragged (single-block, no pad/slice) path.
    x2 = jax.random.uniform(jax.random.PRNGKey(1), (3, 5, 7),
                            dtype=jnp.float32, minval=0.0, maxval=2.0)
    y2 = jax.block_until_ready(log_mod(x2))
    assert y2.shape == x2.shape and y2.dtype == x2.dtype
    assert jnp.allclose(y2, jnp.log(1.0 + x2), atol=1e-6, rtol=1e-5)

    print("KERNEL_OK")
</pallas_src>

<mosaic_0001>
module attributes {stable_mosaic.version = 11 : i64} {
  func.func @_log1p_kernel(%arg0: i32, %arg1: memref<8x256xf32, #tpu.memory_space<vmem>>, %arg2: memref<8x256xf32, #tpu.memory_space<vmem>>) attributes {dimension_semantics = [#tpu.dimension_semantics<parallel>], iteration_bounds = array<i64: 1>, scalar_prefetch = 0 : i64, scratch_operands = 0 : i64, tpu.core_type = #tpu.core_type<tc>, window_params = [{transform_indices = @transform_0, window_bounds = array<i64: 8, 256>}, {transform_indices = @transform_1, window_bounds = array<i64: 8, 256>}]} {
    %c0 = arith.constant 0 : index
    %c0_0 = arith.constant 0 : index
    %0 = vector.load %arg1[%c0, %c0_0] : memref<8x256xf32, #tpu.memory_space<vmem>>, vector<8x256xf32>
    %1 = math.log1p %0 : vector<8x256xf32>
    %c0_1 = arith.constant 0 : index
    %c0_2 = arith.constant 0 : index
    %2 = vector.load %arg2[%c0_1, %c0_2] : memref<8x256xf32, #tpu.memory_space<vmem>>, vector<8x256xf32>
    tpu.vector_store %arg2[%c0_1, %c0_2], %1 {strides = array<i32>} : memref<8x256xf32, #tpu.memory_space<vmem>>, vector<8x256xf32>,
    return
  }
  func.func @transform_0(%arg0: i32) -> (i32, i32) {
    %c0_i32 = arith.constant 0 : i32
    %c0_i32_0 = arith.constant 0 : i32
    return %arg0, %c0_i32 : i32, i32
  }
  func.func @transform_1(%arg0: i32) -> (i32, i32) {
    %c0_i32 = arith.constant 0 : i32
    %c0_i32_0 = arith.constant 0 : i32
    return %arg0, %c0_i32 : i32, i32
  }
}

</mosaic_0001>

<bundles_post_ra>
// kernel: tpu_custom_call.1
= control target key start
LH: loop header
LB: loop body
LE: loop exit
PB: predicated region body
PF: predicated region fallthrough
CT: control target
= control target key end

     0   :  { %6 = vsyncpa [#allocation3], 0  ;;  %s148_s0 = inlined_call_operand.hbm [shape: f32[8,256], index: 0, kind: input, shape index: {}]   ;;  %s149_s1 = inlined_call_operand.hbm [shape: f32[8,256], index: 1, kind: output, shape index: {}]  }
   0x1   :  { %7 = vsyncpa [#allocation4], 0  ;;  %s112_s6 = smov [#allocation2]   ;;  %s64_s10 = scalar_lea.hbm %s148_s0, 256 }
   0x2   :  { %s14_s7 = sshll.u32 %s112_s6, 4  ;;  %p65_p0 = scmp.ne.s32.totalorder %s148_s0, %s64_s10  ;;  %s15_s7 = int_to_ptr.vmem [resolvable:$true] %s14_s7 }
   0x3   :  { %p68_p1 = scmp.lt.u32.totalorder %s64_s10, %s148_s0 }
   0x5   :  { %p70_p2 = pnand %p68_p1, %p65_p0 }
   0x7   :  { %73 = shalt.err (!%p70_p2)
}
   0x8   :  { %s74_s15 = scalar_lea.vmem %s15_s7, 256  ;;  %p79_p4 = scmp.lt.s32.totalorder %s15_s7, %s15_s7 }
   0x9   :  { %p75_p3 = scmp.ne.s32.totalorder %s15_s7, %s74_s15  ;;  %p80_p5 = scmp.lt.s32.totalorder %s74_s15, %s74_s15 }
   0xb   :  { %p81_p6 = por %p80_p5, %p79_p4 }
   0xd   :  { %p82_p7 = pnand %p81_p6, %p75_p3 }
   0xf   :  { %85 = shalt.err (!%p82_p7)
}
  0x10   :  { %17 = dma.hbm_to_vmem [thread:$0]  %s148_s0, 256, %s15_s7, [#allocation3]  }
  0x11   :  { %108 = dma.done.wait [#allocation3], 256  }
  0x12   :  { %109 = vsyncadd [#allocation3], 4294967040  ;;  %v21_v0 = vld [vmem:[#allocation2] sm:$0xff]  ;;  %v22_v1 = vld [vmem:[#allocation2 + $0x8] sm:$0xff]  ;;  %s113_s18 = smov [#allocation5]  }
  0x13   :  { %v23_v2 = vadd.f32 1.0, %v21_v0  ;;  %v32_v3 = vadd.f32 1.0, %v22_v1  ;;  %v26_v4 = vmul.f32 -0.5, %v21_v0  ;;  %v35_v5 = vmul.f32 -0.5, %v22_v1  ;;  %s49_s0 = sshll.u32 %s113_s18, 4  ;;  %s50_s0 = int_to_ptr.vmem [resolvable:$true] %s49_s0 }
  0x14   :  { %v29_v7 = vand.u32 2147483647, %v21_v0  ;;  %v38_v9 = vand.u32 2147483647, %v22_v1  ;;  %s86_s19 = scalar_lea.vmem %s50_s0, 256  ;;  %p91_p9 = scmp.lt.s32.totalorder %s50_s0, %s50_s0 }
  0x15   :  { %60 = vlog2.f32 %v23_v2  ;;  %v27_v6 = vadd.f32 1.0, %v26_v4  ;;  %v36_v8 = vadd.f32 1.0, %v35_v5  ;;  %p87_p8 = scmp.ne.s32.totalorder %s50_s0, %s86_s19  ;;  %p92_p10 = scmp.lt.s32.totalorder %s86_s19, %s86_s19 }
  0x16   :  { %62 = vlog2.f32 %v32_v3  ;;  %vm30_vm0 = vcmp.lt.f32.partialorder %v29_v7, 0.0004427343  ;;  %vm39_vm1 = vcmp.lt.f32.partialorder %v38_v9, 0.0004427343 }
  0x17   :  { %v28_v10 = vmul.f32 %v27_v6, %v21_v0  ;;  %v37_v12 = vmul.f32 %v36_v8, %v22_v1  ;;  %p93_p11 = por %p92_p10, %p91_p9 }
  0x19   :  { %p94_p12 = pnand %p93_p11, %p87_p8 }
  0x1f   :  { %v61_v11 = vpop.eup %60 }
  0x20   :  { %v63_v13 = vpop.eup %62  ;;  %v25_v14 = vmul.f32 0.6931472, %v61_v11 }
  0x21   :  { %v34_v15 = vmul.f32 0.6931472, %v63_v13 }
  0x22   :  { %v31_v16 = vsel %vm30_vm0, %v28_v10, %v25_v14 }
  0x23   :  { %41 = vst [vmem:[#allocation5] sm:$0xff] %v31_v16  ;;  %v40_v17 = vsel %vm39_vm1, %v37_v12, %v34_v15 }
  0x24   :  { %42 = vst [vmem:[#allocation5 + $0x8] sm:$0xff] %v40_v17 }
  0x25   :  { %97 = shalt.err (!%p94_p12)
}
  0x26   :  { %s98_s22 = scalar_lea.hbm %s149_s1, 256 }
  0x27   :  { %p99_p13 = scmp.ne.s32.totalorder %s149_s1, %s98_s22  ;;  %p102_p0 = scmp.lt.u32.totalorder %s98_s22, %s149_s1 }
  0x29   :  { %p104_p1 = pnand %p102_p0, %p99_p13 }
  0x2b   :  { %107 = shalt.err (!%p104_p1)
}
  0x2c   :  { %52 = dma.vmem_to_hbm [thread:$0]  %s50_s0, 256, %s149_s1, [#allocation4]  }
  0x2d   :  { %110 = dma.done.wait [#allocation4], 256  }
  0x2e   :  { %111 = vsyncadd [#allocation4], 4294967040 }
  0x2f   :  { %56 = vsyncpa [#allocation3], 1 }
  0x30   :  { %57 = vsyncpa [#allocation4], 1 }

</bundles_post_ra>
